<compile_context>
chip_gen: v7x
topology: tpu7x:2x2x1
jax: 0.10.0
libtpu: 0.0.40
codegen_flags: <defaults>
</compile_context>

<pallas_src>
import numpy as np
import jax
import jax.numpy as jnp
from jax.experimental import pallas as pl
from jax.experimental.pallas import tpu as pltpu


def make_mdct_matrix(length, window=True, transform="cosine", dtype=jnp.float32):
    """Deterministic precompute of the MDCT/MDST basis (matches _precompute)."""
    assert 2 <= length and length % 2 == 0
    L2 = length
    L = L2 // 2
    n = np.arange(L2, dtype=np.float64) + 0.5
    k = np.pi / L * n[:L]
    n = n + L / 2
    z = 2.0 / L
    if window != "rectangular" or window is True:
        z *= 2
    z = z ** 0.5
    if transform == "cosine":
        W = z * np.cos(k[None, :] * n[:, None])
    elif transform == "sine":
        W = z * np.sin(k[None, :] * n[:, None])
    else:
        raise ValueError("transform must be either 'cosine' or 'sine'.")
    return jnp.asarray(W, dtype=dtype)  # shape (L2, L2//2)


def _mdct_kernel(x_ref, w_ref, o_ref):
    # x_ref: (tm, L2), w_ref: (L2, L2/2), o_ref: (tm, L2/2)
    o_ref[...] = jnp.dot(
        x_ref[...], w_ref[...], preferred_element_type=jnp.float32
    ).astype(o_ref.dtype)


def _round_up(a, b):
    return (a + b - 1) // b * b


def mdct_forward(x, W, *, target_tile_bytes=1 << 20, vmem_budget_bytes=24 << 20):
    """Apply MDCT/MDST: x (..., L2) @ W (L2, L2/2) -> (..., L2/2)."""
    L2, L = W.shape
    assert x.shape[-1] == L2, "dimension of input must equal `length`"
    lead = x.shape[:-1]
    M = int(np.prod(lead)) if lead else 1

    # Match W dtype to x (bf16 inputs -> bf16 MXU path, f32 accumulate inside).
    W = W.astype(x.dtype)
    x2 = x.reshape(M, L2)

    itemsize = jnp.dtype(x.dtype).itemsize
    w_bytes = L2 * L * itemsize
    bytes_per_row = L2 * itemsize
    per_row_vmem = 2 * (L2 + L) * itemsize        # double-buffered in + out, per row

    # Row-tile selection:
    #   target ~1 MiB of x per grid step, capped by VMEM budget and the problem.
    tm_cap = max(8, (vmem_budget_bytes - 2 * w_bytes) // per_row_vmem)
    tm = max(8, target_tile_bytes // bytes_per_row)
    tm = int(min(tm, tm_cap, 4096))
    if tm >= M:
        tm = _round_up(M, 8)                      # one tile covers everything
    elif tm >= 128:
        tm = (tm // 128) * 128                    # fill the MXU M dimension
    else:
        tm = max(8, (tm // 8) * 8)                # sublane multiple

    grid = (pl.cdiv(M, tm),)                      # ragged last block handled by Pallas

    # Scoped-VMEM limit: double-buffered tiles + W (x2) + headroom, capped so it
    # stays valid on v7x's 64 MiB physical VMEM.
    vmem_needed = tm * per_row_vmem + 2 * w_bytes
    vmem_limit = int(min(64 << 20, vmem_needed + (4 << 20)))

    cost = pl.CostEstimate(
        flops=2 * M * L2 * L,
        transcendentals=0,
        bytes_accessed=M * L2 * itemsize + w_bytes + M * L * itemsize,
    )

    out = pl.pallas_call(
        _mdct_kernel,
        out_shape=jax.ShapeDtypeStruct((M, L), x.dtype),
        grid_spec=pl.GridSpec(
            grid=grid,
            in_specs=[
                pl.BlockSpec((tm, L2), lambda i: (i, 0)),
                pl.BlockSpec((L2, L), lambda i: (0, 0)),   # W resident across steps
            ],
            out_specs=pl.BlockSpec((tm, L), lambda i: (i, 0)),
        ),
        compiler_params=pltpu.CompilerParams(
            dimension_semantics=("parallel",),
            vmem_limit_bytes=vmem_limit,
        ),
        cost_estimate=cost,
    )(x2, W)

    return out.reshape(*lead, L)


if __name__ == "__main__":
    length = 64          # L2 (must be even)
    batch, seq = 2, 8    # leading "..." dims

    key = jax.random.PRNGKey(0)
    x = jax.random.normal(key, (batch, seq, length), dtype=jnp.float32)

    W = make_mdct_matrix(length, window=True, transform="cosine", dtype=jnp.float32)

    out = jax.block_until_ready(mdct_forward(x, W))

    # Reference check in plain JAX (same math as torch.matmul(x, W)).
    ref = jnp.matmul(x, W)
    np.testing.assert_allclose(np.asarray(out), np.asarray(ref), rtol=1e-5, atol=1e-5)
    assert out.shape == (batch, seq, length // 2)

    # Ragged-grid path: M = 3*70 = 210 rows; a small tile target forces >1 grid
    # step with a partially out-of-bounds last block (no wrapper-side padding).
    x_big = jax.random.normal(jax.random.PRNGKey(1), (3, 70, length), dtype=jnp.float32)
    out_big = jax.block_until_ready(mdct_forward(x_big, W, target_tile_bytes=32 * 1024))
    ref_big = jnp.matmul(x_big, W)
    np.testing.assert_allclose(np.asarray(out_big), np.asarray(ref_big),
                               rtol=1e-5, atol=1e-5)

    # Sine-transform variant (MDST).
    Ws = make_mdct_matrix(length, window=True, transform="sine", dtype=jnp.float32)
    out_s = jax.block_until_ready(mdct_forward(x, Ws))
    np.testing.assert_allclose(np.asarray(out_s), np.asarray(jnp.matmul(x, Ws)),
                               rtol=1e-5, atol=1e-5)

    print("KERNEL_OK")
</pallas_src>

<mosaic_0001>
module attributes {stable_mosaic.version = 11 : i64} {
  func.func @_mdct_kernel(%arg0: i32, %arg1: memref<16x64xf32, #tpu.memory_space<vmem>>, %arg2: memref<64x32xf32, #tpu.memory_space<vmem>>, %arg3: memref<16x32xf32, #tpu.memory_space<vmem>>) attributes {dimension_semantics = [#tpu.dimension_semantics<parallel>], iteration_bounds = array<i64: 1>, scalar_prefetch = 0 : i64, scratch_operands = 0 : i64, tpu.core_type = #tpu.core_type<tc>, window_params = [{transform_indices = @transform_0, window_bounds = array<i64: 16, 64>}, {pipeline_mode = #tpu.pipeline_mode<synchronous>, transform_indices = @transform_1, window_bounds = array<i64: 64, 32>}, {transform_indices = @transform_2, window_bounds = array<i64: 16, 32>}]} {
    %c0 = arith.constant 0 : index
    %c0_0 = arith.constant 0 : index
    %0 = vector.load %arg1[%c0, %c0_0] : memref<16x64xf32, #tpu.memory_space<vmem>>, vector<16x64xf32>
    %c0_1 = arith.constant 0 : index
    %c0_2 = arith.constant 0 : index
    %1 = vector.load %arg2[%c0_1, %c0_2] : memref<64x32xf32, #tpu.memory_space<vmem>>, vector<64x32xf32>
    %cst = arith.constant dense<0.000000e+00> : vector<16x32xf32>
    %2 = tpu.matmul %0, %1, %cst {dimension_numbers = #tpu.dot_dimension_numbers<[1], [0], [0], [1], [0, 0, 1, 1], [], []>} : vector<16x64xf32>, vector<64x32xf32>, vector<16x32xf32> -> vector<16x32xf32>
    %c0_3 = arith.constant 0 : index
    %c0_4 = arith.constant 0 : index
    %3 = vector.load %arg3[%c0_3, %c0_4] : memref<16x32xf32, #tpu.memory_space<vmem>>, vector<16x32xf32>
    tpu.vector_store %arg3[%c0_3, %c0_4], %2 {strides = array<i32>} : memref<16x32xf32, #tpu.memory_space<vmem>>, vector<16x32xf32>,
    return
  }
  func.func @transform_0(%arg0: i32) -> (i32, i32) {
    %c0_i32 = arith.constant 0 : i32
    %c0_i32_0 = arith.constant 0 : i32
    return %arg0, %c0_i32 : i32, i32
  }
  func.func @transform_1(%arg0: i32) -> (i32, i32) {
    %c0_i32 = arith.constant 0 : i32
    %c0_i32_0 = arith.constant 0 : i32
    %c0_i32_1 = arith.constant 0 : i32
    return %c0_i32, %c0_i32_0 : i32, i32
  }
  func.func @transform_2(%arg0: i32) -> (i32, i32) {
    %c0_i32 = arith.constant 0 : i32
    %c0_i32_0 = arith.constant 0 : i32
    return %arg0, %c0_i32 : i32, i32
  }
}

</mosaic_0001>

<bundles_post_ra>
// kernel: tpu_custom_call.1
= control target key start
LH: loop header
LB: loop body
LE: loop exit
PB: predicated region body
PF: predicated region fallthrough
CT: control target
= control target key end

     0   :  { %vm22_vm0 = vcmask 523264   ;;  %s259_s0 = inlined_call_operand.vmem [shape: f32[16,64], index: 0, kind: input, shape index: {}]   ;;  %s260_s1 = inlined_call_operand.vmem [shape: f32[64,32], index: 1, kind: input, shape index: {}]   ;;  %s261_s2 = inlined_call_operand.hbm [shape: f32[16,32], index: 2, kind: output, shape index: {}]  }
   0x1   :  { %v14_v0 = vld [vmem:[%s260_s1] sm:$0xff]  ;;  %v15_v1 = vld [vmem:[%s260_s1 + $0x8] sm:$0xff]  ;;  %v16_v2 = vld [vmem:[%s260_s1 + $0x10] sm:$0xff] }
   0x2   :  { %v154_v3 = vpack.c.bf16 %v15_v1, %v14_v0  ;;  %v17_v4 = vld [vmem:[%s260_s1 + $0x18] sm:$0xff]  ;;  %v18_v6 = vld [vmem:[%s260_s1 + $0x20] sm:$0xff]  ;;  %v19_v7 = vld [vmem:[%s260_s1 + $0x28] sm:$0xff] }
   0x3   :  { %v158_v5 = vpack.c.bf16 %v17_v4, %v16_v2  ;;  %v12_v8 = vld [vmem:[%s259_s0] sm:$0xff] }
   0x4   :  { %155 = vmatprep.subr.bf16.mxu0 %v154_v3  ;;  %151 = vmatprep.mubr.msk.f32.mxu0 %vm22_vm0, %v12_v8 }
   0x5   :  { %7 = vsyncpa [#allocation3], 0  ;;  %157 = vmatpush3.bf16.msra.mxu0 %v154_v3  ;;  %v162_v9 = vpack.c.bf16 %v19_v7, %v18_v6  ;;  %v20_v10 = vld [vmem:[%s260_s1 + $0x30] sm:$0xff]  ;;  %v21_v11 = vld [vmem:[%s260_s1 + $0x38] sm:$0xff]  ;;  %s197_s29 = smov [#allocation2]   ;;  %vm104_vm1 = vcmask 261120  }
   0x6   :  { %159 = vmatprep.subr.bf16.mxu0 %v158_v5  ;;  %v166_v12 = vpack.c.bf16 %v21_v11, %v20_v10  ;;  %v13_v13 = vld [vmem:[%s259_s0 + $0x8] sm:$0xff]  ;;  %s112_s30 = sshll.u32 %s197_s29, 4  ;;  %s113_s30 = int_to_ptr.vmem [resolvable:$true] %s112_s30 }
   0x7   :  { %s173_s1 = scalar_lea.vmem %s113_s30, 256  ;;  %p178_p1 = scmp.lt.s32.totalorder %s113_s30, %s113_s30 }
   0x8   :  { %p174_p0 = scmp.ne.s32.totalorder %s113_s30, %s173_s1  ;;  %p179_p2 = scmp.lt.s32.totalorder %s173_s1, %s173_s1 }
   0x9   :  { %161 = vmatpush3.bf16.msra.mxu0 %v158_v5 }
   0xa   :  { %163 = vmatprep.subr.bf16.mxu0 %v162_v9  ;;  %p180_p3 = por %p179_p2, %p178_p1 }
   0xc   :  { %p181_p4 = pnand %p180_p3, %p174_p0 }
   0xd   :  { %165 = vmatpush3.bf16.msra.mxu0 %v162_v9 }
   0xe   :  { %167 = vmatprep.subr.bf16.mxu0 %v166_v12 }
  0x11   :  { %169 = vmatpush3.bf16.msra.mxu0 %v166_v12 }
  0x14   :  { %152 = vmatmul.mubr.msk.f32.vlgmr.msra.gmra.mrb[0].mxu0 %vm22_vm0, %v13_v13 }
  0xe7   :  { %v153_v14 = vpop.f32.mrb[0].mxu0 }
  0xe8   :  { %106 = vst.msk [vmem:[#allocation2 + $0x8] sm:$0xff] %vm104_vm1, %v153_v14  ;;  %v95_v15 = vpop.f32.mrb[1].mxu0 }
  0xe9   :  { %105 = vst.msk [vmem:[#allocation2] sm:$0xff] %vm104_vm1, %v95_v15 }
  0xea   :  { %184 = shalt.err (!%p181_p4)
}
  0xeb   :  { %s185_s0 = scalar_lea.hbm %s261_s2, 256 }
  0xec   :  { %p186_p5 = scmp.ne.s32.totalorder %s261_s2, %s185_s0  ;;  %p189_p6 = scmp.lt.u32.totalorder %s185_s0, %s261_s2 }
  0xee   :  { %p191_p7 = pnand %p189_p6, %p186_p5 }
  0xf0   :  { %194 = shalt.err (!%p191_p7)
}
  0xf1   :  { %s198_s9 = smov 128   ;;  %s199_s10 = smov 8  }
  0xf2   :  { %118 = dma.vmem_to_hbm [thread:$0]  %s113_s30, 256, %s261_s2, [#allocation3], %s198_s9, %s198_s9, %s199_s10  }
  0xf3   :  { %195 = dma.done.wait [#allocation3], 256  }
  0xf4   :  { %196 = vsyncadd [#allocation3], 4294967040 }
  0xf5   :  { %122 = vsyncpa [#allocation3], 1 }

</bundles_post_ra>
